<compile_context>
chip_gen: v6e
topology: v6e:2x2x1
jax: 0.10.0
libtpu: 0.0.40
codegen_flags: <defaults>
</compile_context>

<pallas_src>
import numpy as np
import jax
import jax.numpy as jnp
from jax.experimental import pallas as pl
from jax.experimental.pallas import tpu as pltpu


def _ffm_kernel(left_ref, right_ref, lin_ref, out_ref):
    # left/right: (TB, P*D) operand tiles (f32 or bf16); lin: (TB, 1) f32
    # precomputed linear-term-plus-bias; out: (TB, 1) f32.
    l = left_ref[...].astype(jnp.float32)                   # upcast: accumulate in f32
    r = right_ref[...].astype(jnp.float32)
    ffm = jnp.sum(l * r, axis=-1, keepdims=True)            # (TB, 1)
    out_ref[...] = jax.nn.sigmoid(lin_ref[...] + ffm)


def ffm_forward(x_idx, ffm_tables, lin_w, lin_bias, offsets,
                *, block_b=128, operand_dtype=jnp.float32):
    """FFM forward.

    x_idx:      (B, F) int32 per-field categorical indices
    ffm_tables: (F, total, D) float32 field-aware embedding tables
    lin_w:      (total, 1) float32 linear embedding weights
    lin_bias:   (1,) float32
    offsets:    (F,) int32 cumulative field offsets
    Returns (B,) float32, matching torch.sigmoid(x.squeeze(1)).
    """
    B, F = x_idx.shape
    D = ffm_tables.shape[-1]
    idx = x_idx + offsets[None, :]                          # (B, F) global rows

    # Static upper-triangular pair lists: (0,1),(0,2),...,(F-2,F-1).
    pi, pj = np.triu_indices(F, k=1)
    P = int(pi.shape[0])

    # Gather only the needed pairs (plain-JAX glue):
    #   left[b, p, :]  = table_{j}[ idx[b, i] ]   (== xs[j][:, i] in the PyTorch code)
    #   right[b, p, :] = table_{i}[ idx[b, j] ]   (== xs[i][:, j])
    # TODO(synk): for small vocabularies the tables could live in VMEM and the
    # gather move inside the kernel (PrefetchScalarGridSpec with idx in SMEM),
    # removing this HBM round trip entirely.
    left = ffm_tables[pj[None, :], idx[:, pi], :]           # (B, P, D)
    right = ffm_tables[pi[None, :], idx[:, pj], :]          # (B, P, D)
    left = left.reshape(B, P * D).astype(operand_dtype)     # lane-dense operands
    right = right.reshape(B, P * D).astype(operand_dtype)

    # Linear term + bias is tiny (B*F gather + reduce) -> fold it in the wrapper.
    linear = jnp.sum(lin_w[idx, 0], axis=1) + lin_bias[0]   # (B,)
    linear = linear.astype(jnp.float32)[:, None]            # (B, 1)

    # Pad the batch so the grid divides evenly (padded rows sliced off below).
    num_tiles = -(-B // block_b)
    Bp = num_tiles * block_b
    if Bp != B:
        pad = Bp - B
        left = jnp.pad(left, ((0, pad), (0, 0)))
        right = jnp.pad(right, ((0, pad), (0, 0)))
        linear = jnp.pad(linear, ((0, pad), (0, 0)))

    out = pl.pallas_call(
        _ffm_kernel,
        out_shape=jax.ShapeDtypeStruct((Bp, 1), jnp.float32),
        grid=(num_tiles,),
        in_specs=[
            pl.BlockSpec((block_b, P * D), lambda b: (b, 0)),
            pl.BlockSpec((block_b, P * D), lambda b: (b, 0)),
            pl.BlockSpec((block_b, 1), lambda b: (b, 0)),
        ],
        out_specs=pl.BlockSpec((block_b, 1), lambda b: (b, 0)),
        compiler_params=pltpu.CompilerParams(
            # Batch tiles are independent -> megacore-shardable on v7x.
            dimension_semantics=("parallel",),
            # Explicit, generation-safe VMEM budget.  Double-buffered inputs use
            # 2 inputs x 2 buffers x block_b*P*D*elt_size, far below this cap on
            # v5e (128 MiB), v6e (128 MiB) and v7x (64 MiB physical).
            vmem_limit_bytes=32 * 1024 * 1024,
        ),
    )(left, right, linear)
    return out[:B, 0]                                       # (B,), like .squeeze(1)


def ref_forward(x_idx, ffm_tables, lin_w, lin_bias, offsets):
    """Pure-JAX reference mirroring the PyTorch module exactly."""
    idx = x_idx + offsets[None, :]
    F = x_idx.shape[1]
    xs = [ffm_tables[i][idx] for i in range(F)]             # each (B, F, D)
    terms = []
    for i in range(F - 1):
        for j in range(i + 1, F):
            terms.append(xs[j][:, i] * xs[i][:, j])
    ix = jnp.stack(terms, axis=1)                           # (B, num_pairs, D)
    ffm_term = jnp.sum(jnp.sum(ix, axis=1), axis=1, keepdims=True)   # (B, 1)
    lin = jnp.sum(lin_w[idx], axis=1) + lin_bias            # (B, 1)
    return jax.nn.sigmoid((lin + ffm_term)[:, 0])           # (B,)


if __name__ == "__main__":
    # Small deterministic problem: 4 fields, embed_dim=32, batch=256 (2 grid tiles).
    field_dims = (10, 7, 5, 3)
    embed_dim = 32
    B = 256
    F = len(field_dims)
    total = int(sum(field_dims))
    offsets = jnp.asarray((0, *np.cumsum(field_dims)[:-1]), dtype=jnp.int32)

    key = jax.random.PRNGKey(0)
    k_emb, k_lin, k_x = jax.random.split(key, 3)

    # Deterministic parameter init (xavier-uniform-ish FFM tables, small-normal linear, zero bias).
    ffm_tables = jax.random.uniform(
        k_emb, (F, total, embed_dim), jnp.float32, -0.1, 0.1)
    lin_w = jax.random.normal(k_lin, (total, 1), jnp.float32) * 0.01
    lin_bias = jnp.zeros((1,), jnp.float32)

    # Per-field categorical indices in [0, field_dims[f]).
    ks = jax.random.split(k_x, F)
    x_idx = jnp.stack(
        [jax.random.randint(ks[f], (B,), 0, field_dims[f]) for f in range(F)],
        axis=1,
    ).astype(jnp.int32)

    ref = ref_forward(x_idx, ffm_tables, lin_w, lin_bias, offsets)

    # f32 operands: strict match against the reference.
    out_f32 = jax.jit(
        lambda *a: ffm_forward(*a, block_b=128, operand_dtype=jnp.float32)
    )(x_idx, ffm_tables, lin_w, lin_bias, offsets)
    out_f32 = jax.block_until_ready(out_f32)
    assert out_f32.shape == (B,)
    np.testing.assert_allclose(np.asarray(out_f32), np.asarray(ref),
                               rtol=1e-5, atol=1e-5)

    # bf16 operands (halves DMA on all generations), f32 accumulation in-kernel.
    out_bf16 = jax.jit(
        lambda *a: ffm_forward(*a, block_b=128, operand_dtype=jnp.bfloat16)
    )(x_idx, ffm_tables, lin_w, lin_bias, offsets)
    out_bf16 = jax.block_until_ready(out_bf16)
    np.testing.assert_allclose(np.asarray(out_bf16), np.asarray(ref),
                               rtol=1e-2, atol=1e-2)

    print("KERNEL_OK")
</pallas_src>

<mosaic_0001>
module attributes {stable_mosaic.version = 11 : i64} {
  func.func @_ffm_kernel(%arg0: i32, %arg1: memref<128x192xf32, #tpu.memory_space<vmem>>, %arg2: memref<128x192xf32, #tpu.memory_space<vmem>>, %arg3: memref<128x1xf32, #tpu.memory_space<vmem>>, %arg4: memref<128x1xf32, #tpu.memory_space<vmem>>) attributes {dimension_semantics = [#tpu.dimension_semantics<parallel>], iteration_bounds = array<i64: 2>, scalar_prefetch = 0 : i64, scratch_operands = 0 : i64, tpu.core_type = #tpu.core_type<tc>, window_params = [{transform_indices = @transform_0, window_bounds = array<i64: 128, 192>}, {transform_indices = @transform_1, window_bounds = array<i64: 128, 192>}, {transform_indices = @transform_2, window_bounds = array<i64: 128, 1>}, {transform_indices = @transform_3, window_bounds = array<i64: 128, 1>}]} {
    %c0 = arith.constant 0 : index
    %c0_0 = arith.constant 0 : index
    %0 = vector.load %arg1[%c0, %c0_0] : memref<128x192xf32, #tpu.memory_space<vmem>>, vector<128x192xf32>
    %c0_1 = arith.constant 0 : index
    %c0_2 = arith.constant 0 : index
    %1 = vector.load %arg2[%c0_1, %c0_2] : memref<128x192xf32, #tpu.memory_space<vmem>>, vector<128x192xf32>
    %2 = arith.mulf %0, %1 : vector<128x192xf32>
    %cst = arith.constant dense<0.000000e+00> : vector<128xf32>
    %3 = vector.multi_reduction <add>, %2, %cst [1] : vector<128x192xf32> to vector<128xf32>
    %4 = vector.shape_cast %3 : vector<128xf32> to vector<128x1xf32>
    %c0_3 = arith.constant 0 : index
    %c0_4 = arith.constant 0 : index
    %5 = vector.load %arg3[%c0_3, %c0_4] : memref<128x1xf32, #tpu.memory_space<vmem>>, vector<128x1xf32>
    %6 = arith.addf %5, %4 : vector<128x1xf32>
    %7 = arith.negf %6 : vector<128x1xf32>
    %8 = math.exp %7 : vector<128x1xf32>
    %cst_5 = arith.constant 1.000000e+00 : f32
    %9 = vector.broadcast %cst_5 : f32 to vector<128x1xf32>
    %10 = arith.addf %9, %8 : vector<128x1xf32>
    %11 = arith.divf %9, %10 : vector<128x1xf32>
    %c0_6 = arith.constant 0 : index
    %c0_7 = arith.constant 0 : index
    %12 = vector.load %arg4[%c0_6, %c0_7] : memref<128x1xf32, #tpu.memory_space<vmem>>, vector<128x1xf32>
    tpu.vector_store %arg4[%c0_6, %c0_7], %11 {strides = array<i32>} : memref<128x1xf32, #tpu.memory_space<vmem>>, vector<128x1xf32>,
    return
  }
  func.func @transform_0(%arg0: i32) -> (i32, i32) {
    %c0_i32 = arith.constant 0 : i32
    %c0_i32_0 = arith.constant 0 : i32
    return %arg0, %c0_i32 : i32, i32
  }
  func.func @transform_1(%arg0: i32) -> (i32, i32) {
    %c0_i32 = arith.constant 0 : i32
    %c0_i32_0 = arith.constant 0 : i32
    return %arg0, %c0_i32 : i32, i32
  }
  func.func @transform_2(%arg0: i32) -> (i32, i32) {
    %c0_i32 = arith.constant 0 : i32
    %c0_i32_0 = arith.constant 0 : i32
    return %arg0, %c0_i32 : i32, i32
  }
  func.func @transform_3(%arg0: i32) -> (i32, i32) {
    %c0_i32 = arith.constant 0 : i32
    %c0_i32_0 = arith.constant 0 : i32
    return %arg0, %c0_i32 : i32, i32
  }
}

</mosaic_0001>

<bundles_post_ra>
// kernel: _lambda_.1
= control target key start
LH: loop header
LB: loop body
LE: loop exit
PB: predicated region body
PF: predicated region fallthrough
CT: control target
= control target key end

     0   :  { %s745_s12 = smov 0   ;;  %s912_s0 = inlined_call_operand.vmem [shape: f32[256,192], index: 0, kind: input, shape index: {}]   ;;  %s913_s1 = inlined_call_operand.vmem [shape: f32[256,192], index: 1, kind: input, shape index: {}]   ;;  %s914_s2 = inlined_call_operand.vmem [shape: f32[256,1], index: 2, kind: input, shape index: {}]   ;;  %s915_s3 = inlined_call_operand.vmem [shape: f32[256,1], index: 3, kind: output, shape index: {}]  }
   0x1 LB: > { %s610_s13 = sadd.s32 4294967295, %s723_s12   ;;  %p614_p0 = scmp.ge.s32.totalorder %s723_s12, 1  ;;  %s723_s12 = sphi %s745_s12, %s13_s12  }
   0x2   : > { %p162_p1 = scmp.lt.s32.totalorder %s723_s12, 3 }
   0x4   : > { %p163_p2 = pnand %p614_p0, %p162_p1 }
   0x5   : > { %s615_s14 = sshll.u32 (!%p163_p2), %s610_s13, 4 }
   0x6   : > { %166 = sbr.rel (%p163_p2) target bundleno = 226 (0xe2), region = 32  ;;  %p199_p3 = scmp.lt.s32.totalorder (!%p163_p2), %s615_s14, 31 }
   0xb   : > { %s917_s14 = smov (!%p199_p3, %s615_s14), 31  ;;  %vm320_vm0 = vcmask 523264   ;;  %vm513_vm1 = vcmask 7168  }
   0xc   : > { %s643_s15 = sshll.u32 %s917_s14, 4  ;;  %s622_s22 = sshll.u32 %s917_s14, 3 }
   0xd   : > { %s759_s18 = scalar_lea.vmem %s912_s0, %s643_s15  ;;  %s764_s21 = scalar_lea.vmem %s913_s1, %s643_s15 }
   0xe   : > { %v228_v0 = vld [vmem:[%s759_s18 + $0x20] sm:$0xff]  ;;  %v229_v1 = vld [vmem:[%s759_s18 + $0x28] sm:$0xff]  ;;  %v230_v10 = vld [vmem:[%s759_s18 + $0x30] sm:$0xff]  ;;  %s852_s25 = scalar_lea.vmem %s914_s2, %s622_s22  ;;  %s875_s28 = scalar_lea.vmem %s915_s3, %s622_s22 }
   0xf   : > { %v260_v2 = vld [vmem:[%s764_s21 + $0x20] sm:$0xff]  ;;  %v261_v3 = vld [vmem:[%s764_s21 + $0x28] sm:$0xff]  ;;  %v231_v13 = vld [vmem:[%s759_s18 + $0x38] sm:$0xff] }
  0x10   : > { %v292_v4 = vmul.f32 %v260_v2, %v228_v0  ;;  %v224_v5 = vld [vmem:[%s759_s18] sm:$0xff]  ;;  %v225_v6 = vld [vmem:[%s759_s18 + $0x8] sm:$0xff]  ;;  %v293_v7 = vmul.f32 %v261_v3, %v229_v1  ;;  %v262_v14 = vld [vmem:[%s764_s21 + $0x30] sm:$0xff] }
  0x11   : > { %v256_v8 = vld [vmem:[%s764_s21] sm:$0xff]  ;;  %v257_v9 = vld [vmem:[%s764_s21 + $0x8] sm:$0xff]  ;;  %v263_v15 = vld [vmem:[%s764_s21 + $0x38] sm:$0xff]  ;;  %v294_v17 = vmul.f32 %v262_v14, %v230_v10 }
  0x12   : > { %v288_v11 = vmul.f32 %v256_v8, %v224_v5  ;;  %v289_v12 = vmul.f32 %v257_v9, %v225_v6  ;;  %v329_v16 = vsel %vm320_vm0, %v293_v7, 0.0  ;;  %v295_v18 = vmul.f32 %v263_v15, %v231_v13  ;;  %v226_v19 = vld [vmem:[%s759_s18 + $0x10] sm:$0xff]  ;;  %v227_v20 = vld [vmem:[%s759_s18 + $0x18] sm:$0xff]  ;;  %v232_v33 = vld [vmem:[%s759_s18 + $0x40] sm:$0xff] }
  0x13   : > { %v258_v21 = vld [vmem:[%s764_s21 + $0x10] sm:$0xff]  ;;  %v330_v22 = vadd.f32 %v329_v16, %v292_v4  ;;  %v259_v24 = vld [vmem:[%s764_s21 + $0x18] sm:$0xff]  ;;  %v233_v37 = vld [vmem:[%s759_s18 + $0x48] sm:$0xff] }
  0x14   : > { %v321_v23 = vsel %vm320_vm0, %v289_v12, 0.0  ;;  %v290_v25 = vmul.f32 %v258_v21, %v226_v19  ;;  %v234_v26 = vld [vmem:[%s759_s18 + $0x50] sm:$0xff]  ;;  %v235_v27 = vld [vmem:[%s759_s18 + $0x58] sm:$0xff]  ;;  %v333_v29 = vsel %vm320_vm0, %v295_v18, 0.0  ;;  %v291_v30 = vmul.f32 %v259_v24, %v227_v20  ;;  %v264_v38 = vld [vmem:[%s764_s21 + $0x40] sm:$0xff] }
  0x15   : > { %v322_v28 = vadd.f32 %v321_v23, %v288_v11  ;;  %v266_v31 = vld [vmem:[%s764_s21 + $0x50] sm:$0xff]  ;;  %v267_v32 = vld [vmem:[%s764_s21 + $0x58] sm:$0xff]  ;;  %331 = vadd.xlane.f32.xlu1 %v330_v22  ;;  %v334_v34 = vadd.f32 %v333_v29, %v294_v17  ;;  %v265_v39 = vld [vmem:[%s764_s21 + $0x48] sm:$0xff]  ;;  %v296_v41 = vmul.f32 %v264_v38, %v232_v33 }
  0x16   : > { %v298_v35 = vmul.f32 %v266_v31, %v234_v26  ;;  %v299_v36 = vmul.f32 %v267_v32, %v235_v27  ;;  %v325_v40 = vsel %vm320_vm0, %v291_v30, 0.0  ;;  %v297_v42 = vmul.f32 %v265_v39, %v233_v37  ;;  %v238_v43 = vld [vmem:[%s759_s18 + $0x70] sm:$0xff]  ;;  %v239_v44 = vld [vmem:[%s759_s18 + $0x78] sm:$0xff]  ;;  %v236_v49 = vld [vmem:[%s759_s18 + $0x60] sm:$0xff] }
  0x17   : > { %323 = vadd.xlane.f32.xlu0 %v322_v28  ;;  %v270_v45 = vld [vmem:[%s764_s21 + $0x70] sm:$0xff]  ;;  %v326_v46 = vadd.f32 %v325_v40, %v290_v25  ;;  %v271_v48 = vld [vmem:[%s764_s21 + $0x78] sm:$0xff]  ;;  %v237_v50 = vld [vmem:[%s759_s18 + $0x68] sm:$0xff] }
  0x18   : > { %v341_v47 = vsel %vm320_vm0, %v299_v36, 0.0  ;;  %v337_v51 = vsel %vm320_vm0, %v297_v42, 0.0  ;;  %v303_v52 = vmul.f32 %v271_v48, %v239_v44  ;;  %v268_v53 = vld [vmem:[%s764_s21 + $0x60] sm:$0xff]  ;;  %v269_v54 = vld [vmem:[%s764_s21 + $0x68] sm:$0xff]  ;;  %v302_v56 = vmul.f32 %v270_v45, %v238_v43  ;;  %v242_v58 = vld [vmem:[%s759_s18 + $0x90] sm:$0xff] }
  0x19   : > { %335 = vadd.xlane.f32.xlu1 %v334_v34  ;;  %v342_v55 = vadd.f32 %v341_v47, %v298_v35  ;;  %v301_v57 = vmul.f32 %v269_v54, %v237_v50  ;;  %v243_v59 = vld [vmem:[%s759_s18 + $0x98] sm:$0xff]  ;;  %v338_v61 = vadd.f32 %v337_v51, %v296_v41  ;;  %v300_v63 = vmul.f32 %v268_v53, %v236_v49  ;;  %v274_v0 = vld [vmem:[%s764_s21 + $0x90] sm:$0xff]  ;;  %v240_v2 = vld [vmem:[%s759_s18 + $0x80] sm:$0xff] }
  0x1a   : > { %v275_v60 = vld [vmem:[%s764_s21 + $0x98] sm:$0xff]  ;;  %v349_v62 = vsel %vm320_vm0, %v303_v52, 0.0  ;;  %v241_v3 = vld [vmem:[%s759_s18 + $0x88] sm:$0xff]  ;;  %v272_v5 = vld [vmem:[%s764_s21 + $0x80] sm:$0xff]  ;;  %v306_v11 = vmul.f32 %v274_v0, %v242_v58 }
  0x1b   : > { %327 = vadd.xlane.f32.xlu0 %v326_v46  ;;  %v307_v1 = vmul.f32 %v275_v60, %v243_v59  ;;  %v345_v4 = vsel %vm320_vm0, %v301_v57, 0.0  ;;  %v273_v6 = vld [vmem:[%s764_s21 + $0x88] sm:$0xff]  ;;  %v247_v7 = vld [vmem:[%s759_s18 + $0xb8] sm:$0xff]  ;;  %v350_v10 = vadd.f32 %v349_v62, %v302_v56  ;;  %v304_v16 = vmul.f32 %v272_v5, %v240_v2  ;;  %v246_v17 = vld [vmem:[%s759_s18 + $0xb0] sm:$0xff] }
  0x1c   : > { %v305_v8 = vmul.f32 %v273_v6, %v241_v3  ;;  %v279_v9 = vld [vmem:[%s764_s21 + $0xb8] sm:$0xff]  ;;  %v245_v12 = vld [vmem:[%s759_s18 + $0xa8] sm:$0xff]  ;;  %v346_v14 = vadd.f32 %v345_v4, %v300_v63  ;;  %v278_v18 = vld [vmem:[%s764_s21 + $0xb0] sm:$0xff] }
  0x1d   : > { %343 = vadd.xlane.f32.xlu1 %v342_v55  ;;  %v277_v13 = vld [vmem:[%s764_s21 + $0xa8] sm:$0xff]  ;;  %v357_v15 = vsel %vm320_vm0, %v307_v1, 0.0  ;;  %v311_v19 = vmul.f32 %v279_v9, %v247_v7  ;;  %v244_v20 = vld [vmem:[%s759_s18 + $0xa0] sm:$0xff]  ;;  %v251_v24 = vld [vmem:[%s759_s18 + $0xd8] sm:$0xff]  ;;  %v310_v29 = vmul.f32 %v278_v18, %v246_v17 }
  0x1e   : > { %v353_v21 = vsel %vm320_vm0, %v305_v8, 0.0  ;;  %v276_v22 = vld [vmem:[%s764_s21 + $0xa0] sm:$0xff]  ;;  %v309_v23 = vmul.f32 %v277_v13, %v245_v12  ;;  %v283_v25 = vld [vmem:[%s764_s21 + $0xd8] sm:$0xff]  ;;  %v249_v26 = vld [vmem:[%s759_s18 + $0xc8] sm:$0xff]  ;;  %v358_v28 = vadd.f32 %v357_v15, %v306_v11 }
  0x1f   : > { %339 = vadd.xlane.f32.xlu0 %v338_v61  ;;  %v281_v27 = vld [vmem:[%s764_s21 + $0xc8] sm:$0xff]  ;;  %v354_v30 = vadd.f32 %v353_v21, %v304_v16  ;;  %v365_v31 = vsel %vm320_vm0, %v311_v19, 0.0  ;;  %v308_v32 = vmul.f32 %v276_v22, %v244_v20  ;;  %v250_v33 = vld [vmem:[%s759_s18 + $0xd0] sm:$0xff]  ;;  %v315_v35 = vmul.f32 %v283_v25, %v251_v24  ;;  %v248_v36 = vld [vmem:[%s759_s18 + $0xc0] sm:$0xff] }
  0x20   : > { %v282_v34 = vld [vmem:[%s764_s21 + $0xd0] sm:$0xff]  ;;  %v361_v37 = vsel %vm320_vm0, %v309_v23, 0.0  ;;  %v280_v38 = vld [vmem:[%s764_s21 + $0xc0] sm:$0xff]  ;;  %v313_v39 = vmul.f32 %v281_v27, %v249_v26  ;;  %v255_v40 = vld [vmem:[%s759_s18 + $0xf8] sm:$0xff]  ;;  %v366_v44 = vadd.f32 %v365_v31, %v310_v29 }
  0x21   : > { %351 = vadd.xlane.f32.xlu1 %v350_v10  ;;  %v287_v41 = vld [vmem:[%s764_s21 + $0xf8] sm:$0xff]  ;;  %v253_v42 = vld [vmem:[%s759_s18 + $0xe8] sm:$0xff]  ;;  %v314_v45 = vmul.f32 %v282_v34, %v250_v33  ;;  %v362_v46 = vadd.f32 %v361_v37, %v308_v32  ;;  %v373_v47 = vsel %vm320_vm0, %v315_v35, 0.0  ;;  %v312_v48 = vmul.f32 %v280_v38, %v248_v36  ;;  %v254_v49 = vld [vmem:[%s759_s18 + $0xf0] sm:$0xff] }
  0x22   : > { %v285_v43 = vld [vmem:[%s764_s21 + $0xe8] sm:$0xff]  ;;  %v286_v50 = vld [vmem:[%s764_s21 + $0xf0] sm:$0xff]  ;;  %v319_v51 = vmul.f32 %v287_v41, %v255_v40  ;;  %v369_v52 = vsel %vm320_vm0, %v313_v39, 0.0  ;;  %v252_v53 = vld [vmem:[%s759_s18 + $0xe0] sm:$0xff] }
  0x23   : > { %347 = vadd.xlane.f32.xlu0 %v346_v14  ;;  %v284_v54 = vld [vmem:[%s764_s21 + $0xe0] sm:$0xff]  ;;  %v317_v55 = vmul.f32 %v285_v43, %v253_v42  ;;  %v374_v56 = vadd.f32 %v373_v47, %v314_v45  ;;  %v318_v57 = vmul.f32 %v286_v50, %v254_v49  ;;  %v370_v58 = vadd.f32 %v369_v52, %v312_v48  ;;  %v387_v0 = vld [vmem:[%s852_s25 + $0x10] sm:$0xff]  ;;  %v388_v6 = vld [vmem:[%s852_s25 + $0x18] sm:$0xff] }
  0x24   : > { %v381_v59 = vsel %vm320_vm0, %v319_v51, 0.0  ;;  %v316_v60 = vmul.f32 %v284_v54, %v252_v53  ;;  %v385_v1 = vld [vmem:[%s852_s25] sm:$0xff]  ;;  %v386_v8 = vld [vmem:[%s852_s25 + $0x8] sm:$0xff]  ;;  %v392_v22 = vld [vmem:[%s852_s25 + $0x38] sm:$0xff] }
  0x25   : > { %359 = vadd.xlane.f32.xlu1 %v358_v28  ;;  %v377_v61 = vsel %vm320_vm0, %v317_v55, 0.0  ;;  %v382_v62 = vadd.f32 %v381_v59, %v318_v57  ;;  %v390_v14 = vld [vmem:[%s852_s25 + $0x28] sm:$0xff]  ;;  %v389_v16 = vld [vmem:[%s852_s25 + $0x20] sm:$0xff]  ;;  %v391_v24 = vld [vmem:[%s852_s25 + $0x30] sm:$0xff] }
  0x26   : > { %v378_v63 = vadd.f32 %v377_v61, %v316_v60  ;;  %v393_v32 = vld [vmem:[%s852_s25 + $0x40] sm:$0xff]  ;;  %v396_v39 = vld [vmem:[%s852_s25 + $0x58] sm:$0xff]  ;;  %v395_v43 = vld [vmem:[%s852_s25 + $0x50] sm:$0xff] }
  0x27   : > { %355 = vadd.xlane.f32.xlu0 %v354_v30  ;;  %v394_v30 = vld [vmem:[%s852_s25 + $0x48] sm:$0xff]  ;;  %v397_v55 = vld [vmem:[%s852_s25 + $0x60] sm:$0xff] }
  0x28   : > { %v398_v51 = vld [vmem:[%s852_s25 + $0x68] sm:$0xff] }
  0x29   : > { %367 = vadd.xlane.f32.xlu1 %v366_v44 }
  0x2b   : > { %363 = vadd.xlane.f32.xlu0 %v362_v46 }
  0x2d   : > { %375 = vadd.xlane.f32.xlu1 %v374_v56 }
  0x2f   : > { %371 = vadd.xlane.f32.xlu0 %v370_v58 }
  0x31   : > { %383 = vadd.xlane.f32.xlu1 %v382_v62 }
  0x33   : > { %379 = vadd.xlane.f32.xlu0 %v378_v63  ;;  %v400_v63 = vld [vmem:[%s852_s25 + $0x78] sm:$0xff] }
  0x9e   : > { %v332_v2 = vpop.xlane.xlu1 %331 }
  0x9f   : > { %v403_v3 = vadd.f32 %v387_v0, %v332_v2 }
  0xa0   : > { %v324_v4 = vpop.xlane.xlu0 %323 }
  0xa1   : > { %v401_v5 = vadd.f32 %v385_v1, %v324_v4  ;;  %v627_v7 = vmul.f32 -1.442695, %v403_v3  ;;  %v399_v3 = vld [vmem:[%s852_s25 + $0x70] sm:$0xff] }
  0xa2   : > { %v336_v10 = vpop.xlane.xlu1 %335 }
  0xa3   : > { %v625_v9 = vmul.f32 -1.442695, %v401_v5  ;;  %653 = vpow2.f32 %v627_v7  ;;  %v404_v11 = vadd.f32 %v388_v6, %v336_v10 }
  0xa4   : > { %v328_v12 = vpop.xlane.xlu0 %327 }
  0xa5   : > { %655 = vpow2.f32 %v625_v9  ;;  %v402_v13 = vadd.f32 %v386_v8, %v328_v12  ;;  %v628_v15 = vmul.f32 -1.442695, %v404_v11 }
  0xa6   : > { %v344_v18 = vpop.xlane.xlu1 %343 }
  0xa7   : > { %v626_v17 = vmul.f32 -1.442695, %v402_v13  ;;  %657 = vpow2.f32 %v628_v15  ;;  %v406_v19 = vadd.f32 %v390_v14, %v344_v18 }
  0xa8   : > { %v340_v20 = vpop.xlane.xlu0 %339 }
  0xa9   : > { %659 = vpow2.f32 %v626_v17  ;;  %v405_v21 = vadd.f32 %v389_v16, %v340_v20  ;;  %v630_v23 = vmul.f32 -1.442695, %v406_v19 }
  0xaa   : > { %v352_v26 = vpop.xlane.xlu1 %351 }
  0xab   : > { %v629_v25 = vmul.f32 -1.442695, %v405_v21  ;;  %661 = vpow2.f32 %v630_v23  ;;  %v408_v27 = vadd.f32 %v392_v22, %v352_v26 }
  0xac   : > { %v348_v28 = vpop.xlane.xlu0 %347 }
  0xad   : > { %663 = vpow2.f32 %v629_v25  ;;  %v407_v29 = vadd.f32 %v391_v24, %v348_v28  ;;  %v632_v31 = vmul.f32 -1.442695, %v408_v27 }
  0xae   : > { %v360_v34 = vpop.xlane.xlu1 %359 }
  0xaf   : > { %v631_v33 = vmul.f32 -1.442695, %v407_v29  ;;  %665 = vpow2.f32 %v632_v31  ;;  %v410_v35 = vadd.f32 %v394_v30, %v360_v34 }
  0xb0   : > { %v356_v36 = vpop.xlane.xlu0 %355  ;;  %v654_v37 = vpop.eup %653 }
  0xb1   : > { %667 = vpow2.f32 %v631_v33  ;;  %v409_v38 = vadd.f32 %v393_v32, %v356_v36  ;;  %v467_v41 = vadd.f32 1.0, %v654_v37  ;;  %v634_v42 = vmul.f32 -1.442695, %v410_v35 }
  0xb2   : > { %v656_v40 = vpop.eup %655  ;;  %v368_v46 = vpop.xlane.xlu1 %367 }
  0xb3   : > { %v465_v44 = vadd.f32 1.0, %v656_v40  ;;  %v633_v45 = vmul.f32 -1.442695, %v409_v38  ;;  %669 = vrcp.f32 %v467_v41  ;;  %v412_v47 = vadd.f32 %v396_v39, %v368_v46 }
  0xb4   : > { %v364_v48 = vpop.xlane.xlu0 %363  ;;  %v658_v49 = vpop.eup %657 }
  0xb5   : > { %671 = vrcp.f32 %v465_v44  ;;  %v411_v50 = vadd.f32 %v395_v43, %v364_v48  ;;  %v468_v53 = vadd.f32 1.0, %v658_v49  ;;  %v636_v54 = vmul.f32 -1.442695, %v412_v47 }
  0xb6   : > { %v660_v52 = vpop.eup %659  ;;  %673 = vpow2.f32 %v634_v42  ;;  %v376_v58 = vpop.xlane.xlu1 %375 }
  0xb7   : > { %v466_v56 = vadd.f32 1.0, %v660_v52  ;;  %675 = vpow2.f32 %v633_v45  ;;  %v635_v57 = vmul.f32 -1.442695, %v411_v50  ;;  %v414_v59 = vadd.f32 %v398_v51, %v376_v58 }
  0xb8   : > { %677 = vrcp.f32 %v468_v53  ;;  %v372_v60 = vpop.xlane.xlu0 %371  ;;  %v662_v61 = vpop.eup %661 }
  0xb9   : > { %679 = vrcp.f32 %v466_v56  ;;  %v413_v62 = vadd.f32 %v397_v55, %v372_v60  ;;  %v470_v1 = vadd.f32 1.0, %v662_v61  ;;  %v638_v2 = vmul.f32 -1.442695, %v414_v59 }
  0xba   : > { %v664_v0 = vpop.eup %663  ;;  %681 = vpow2.f32 %v636_v54  ;;  %v384_v6 = vpop.xlane.xlu1 %383 }
  0xbb   : > { %v469_v4 = vadd.f32 1.0, %v664_v0  ;;  %683 = vpow2.f32 %v635_v57  ;;  %v637_v5 = vmul.f32 -1.442695, %v413_v62  ;;  %v416_v7 = vadd.f32 %v400_v63, %v384_v6 }
  0xbc   : > { %685 = vrcp.f32 %v470_v1  ;;  %v380_v8 = vpop.xlane.xlu0 %379  ;;  %v666_v9 = vpop.eup %665 }
  0xbd   : > { %687 = vrcp.f32 %v469_v4  ;;  %v415_v10 = vadd.f32 %v399_v3, %v380_v8  ;;  %v472_v12 = vadd.f32 1.0, %v666_v9  ;;  %v640_v13 = vmul.f32 -1.442695, %v416_v7 }
  0xbe   : > { %v668_v11 = vpop.eup %667  ;;  %689 = vpow2.f32 %v638_v2 }
  0xbf   : > { %v471_v14 = vadd.f32 1.0, %v668_v11  ;;  %691 = vpow2.f32 %v637_v5  ;;  %v639_v15 = vmul.f32 -1.442695, %v415_v10 }
  0xc0   : > { %693 = vrcp.f32 %v472_v12  ;;  %v670_v16 = vpop.eup %669 }
  0xc1   : > { %695 = vrcp.f32 %v471_v14  ;;  %516 = vst.msk [vmem:[%s875_s28 + $0x10] sm:$0xff] %vm513_vm1, %v670_v16 }
  0xc2   : > { %v672_v17 = vpop.eup %671  ;;  %697 = vpow2.f32 %v640_v13 }
  0xc3   : > { %v674_v18 = vpop.eup %673  ;;  %514 = vst.msk [vmem:[%s875_s28] sm:$0xff] %vm513_vm1, %v672_v17  ;;  %699 = vpow2.f32 %v639_v15 }
  0xc4   : > { %v676_v19 = vpop.eup %675  ;;  %v474_v20 = vadd.f32 1.0, %v674_v18 }
  0xc5   : > { %v678_v21 = vpop.eup %677  ;;  %v473_v22 = vadd.f32 1.0, %v676_v19 }
  0xc6   : > { %v680_v23 = vpop.eup %679  ;;  %517 = vst.msk [vmem:[%s875_s28 + $0x18] sm:$0xff] %vm513_vm1, %v678_v21  ;;  %701 = vrcp.f32 %v474_v20 }
  0xc7   : > { %v682_v24 = vpop.eup %681  ;;  %515 = vst.msk [vmem:[%s875_s28 + $0x8] sm:$0xff] %vm513_vm1, %v680_v23  ;;  %703 = vrcp.f32 %v473_v22 }
  0xc8   : > { %v684_v25 = vpop.eup %683  ;;  %v476_v26 = vadd.f32 1.0, %v682_v24 }
  0xc9   : > { %v686_v27 = vpop.eup %685  ;;  %v475_v28 = vadd.f32 1.0, %v684_v25 }
  0xca   : > { %v688_v29 = vpop.eup %687  ;;  %519 = vst.msk [vmem:[%s875_s28 + $0x28] sm:$0xff] %vm513_vm1, %v686_v27  ;;  %705 = vrcp.f32 %v476_v26 }
  0xcb   : > { %v690_v30 = vpop.eup %689  ;;  %518 = vst.msk [vmem:[%s875_s28 + $0x20] sm:$0xff] %vm513_vm1, %v688_v29  ;;  %707 = vrcp.f32 %v475_v28 }
  0xcc   : > { %v692_v31 = vpop.eup %691  ;;  %v478_v32 = vadd.f32 1.0, %v690_v30 }
  0xcd   : > { %v694_v33 = vpop.eup %693  ;;  %v477_v34 = vadd.f32 1.0, %v692_v31 }
  0xce   : > { %v696_v35 = vpop.eup %695  ;;  %521 = vst.msk [vmem:[%s875_s28 + $0x38] sm:$0xff] %vm513_vm1, %v694_v33  ;;  %709 = vrcp.f32 %v478_v32 }
  0xcf   : > { %v698_v36 = vpop.eup %697  ;;  %520 = vst.msk [vmem:[%s875_s28 + $0x30] sm:$0xff] %vm513_vm1, %v696_v35  ;;  %711 = vrcp.f32 %v477_v34 }
  0xd0   : > { %v700_v37 = vpop.eup %699  ;;  %v480_v38 = vadd.f32 1.0, %v698_v36 }
  0xd1   : > { %v479_v39 = vadd.f32 1.0, %v700_v37 }
  0xd2   : > { %713 = vrcp.f32 %v480_v38 }
  0xd3   : > { %v702_v40 = vpop.eup %701  ;;  %715 = vrcp.f32 %v479_v39 }
  0xd4   : > { %v704_v41 = vpop.eup %703  ;;  %523 = vst.msk [vmem:[%s875_s28 + $0x48] sm:$0xff] %vm513_vm1, %v702_v40 }
  0xd5   : > { %522 = vst.msk [vmem:[%s875_s28 + $0x40] sm:$0xff] %vm513_vm1, %v704_v41 }
  0xd7   : > { %v706_v42 = vpop.eup %705 }
  0xd8   : > { %v708_v43 = vpop.eup %707  ;;  %525 = vst.msk [vmem:[%s875_s28 + $0x58] sm:$0xff] %vm513_vm1, %v706_v42 }
  0xd9   : > { %524 = vst.msk [vmem:[%s875_s28 + $0x50] sm:$0xff] %vm513_vm1, %v708_v43 }
  0xdb   : > { %v710_v44 = vpop.eup %709 }
  0xdc   : > { %v712_v45 = vpop.eup %711  ;;  %527 = vst.msk [vmem:[%s875_s28 + $0x68] sm:$0xff] %vm513_vm1, %v710_v44 }
  0xdd   : > { %526 = vst.msk [vmem:[%s875_s28 + $0x60] sm:$0xff] %vm513_vm1, %v712_v45 }
  0xdf   : > { %v714_v46 = vpop.eup %713 }
  0xe0   : > { %v716_v47 = vpop.eup %715  ;;  %529 = vst.msk [vmem:[%s875_s28 + $0x78] sm:$0xff] %vm513_vm1, %v714_v46 }
  0xe1   : > { %528 = vst.msk [vmem:[%s875_s28 + $0x70] sm:$0xff] %vm513_vm1, %v716_v47 }
  0xe2 PF: > { %s13_s12 = sadd.s32 1, %s723_s12  }
  0xe3   : > { %p10_p4 = scmp.ge.s32.totalorder %s13_s12, 4  }
  0xe5   :  { %12 = sbr.rel (!%p10_p4) target bundleno = 1 (0x1), region = 68 }

</bundles_post_ra>
